<compile_context>
chip_gen: v6e
topology: v6e:2x2x1
jax: 0.10.0
libtpu: 0.0.40
codegen_flags: <defaults>
</compile_context>

<pallas_src>
import functools
import math

import jax
import jax.numpy as jnp
from jax import lax
from jax.experimental import pallas as pl
from jax.experimental.pallas import tpu as pltpu


def _cdiv(a, b):
    return -(-a // b)


def _round_up(a, m):
    return ((a + m - 1) // m) * m


def _sublane(elem_bytes):
    return {4: 8, 2: 16, 1: 32}.get(elem_bytes, 8)


def _vmem_budgets():
    """(vmem_limit_bytes, per-block f32-equivalent budget) by TPU generation."""
    try:
        cap = int(pltpu.get_tpu_info().vmem_capacity_bytes)
    except Exception:
        cap = 128 * 1024 * 1024
    if cap <= 96 * 1024 * 1024:
        # 64 MiB (v7x-class) parts: ~2-4 MiB blocks already hit the HBM
        # roofline; keep explicit headroom for compiler internal scratch.
        return 44 * 1024 * 1024, 3 * 1024 * 1024
    # 128 MiB parts (v5e / v6e).
    return 64 * 1024 * 1024, 6 * 1024 * 1024


def _even_steps(total, blk, mult):
    """Nudge `blk` so the grid axis gets an even step count (v7x: 2 TCs).

    Best-effort only; never returns a block smaller than `mult`.
    """
    steps = _cdiv(total, blk)
    if steps <= 1 or steps % 2 == 0:
        return blk
    new_blk = _round_up(_cdiv(total, steps + 1), mult)
    if new_blk >= mult and _cdiv(total, new_blk) % 2 == 0:
        return new_blk
    return blk


# --------------------------------------------------------------------------
# Kernels
# --------------------------------------------------------------------------

def _log_softmax_last_kernel(x_ref, o_ref, *, large):
    # Pass 1: reductions in f32 (bf16-safe sum-exp).  clip(+/-large) reproduces
    # the two torch.where(+/-inf) replacements; NaN passes through.
    x = jnp.clip(x_ref[...].astype(jnp.float32), -large, large)
    m = jnp.max(x, axis=-1, keepdims=True)
    lse = m + jnp.log(jnp.sum(jnp.exp(x - m), axis=-1, keepdims=True))
    # Pass 2: re-read + re-clip instead of keeping a block-sized f32 temporary
    # live across the reduction (HBM-bound kernel -> the extra VPU work is free).
    x2 = jnp.clip(x_ref[...].astype(jnp.float32), -large, large)
    o_ref[...] = (x2 - lse).astype(o_ref.dtype)


def _log_softmax_mid_kernel(x_ref, o_ref, *, large):
    # Block shape (pb, red, pt): reduce along the middle (sublane) axis,
    # trailing `post` axis stays lane-dense.
    x = jnp.clip(x_ref[...].astype(jnp.float32), -large, large)
    m = jnp.max(x, axis=1, keepdims=True)
    lse = m + jnp.log(jnp.sum(jnp.exp(x - m), axis=1, keepdims=True))
    x2 = jnp.clip(x_ref[...].astype(jnp.float32), -large, large)
    o_ref[...] = (x2 - lse).astype(o_ref.dtype)


def _lse_last_kernel(x_ref, lse_ref, m_sc, l_sc, *, large, cols):
    # Online LSE across column chunks (grid axis 1, "arbitrary").
    j = pl.program_id(1)

    @pl.when(j == 0)
    def _():
        m_sc[...] = jnp.full_like(m_sc, -jnp.inf)
        l_sc[...] = jnp.zeros_like(l_sc)

    cb = x_ref.shape[-1]
    x = jnp.clip(x_ref[...].astype(jnp.float32), -large, large)
    # Mask lane padding / partial tail chunks so garbage never enters max/sum.
    lane = lax.broadcasted_iota(jnp.int32, x.shape, x.ndim - 1)
    x = jnp.where(j * cb + lane < cols, x, -jnp.inf)

    m_new = jnp.maximum(m_sc[...], jnp.max(x, axis=-1, keepdims=True))
    l_sc[...] = (l_sc[...] * jnp.exp(m_sc[...] - m_new)
                 + jnp.sum(jnp.exp(x - m_new), axis=-1, keepdims=True))
    m_sc[...] = m_new

    @pl.when(j == pl.num_programs(1) - 1)
    def _():
        lse_ref[...] = m_sc[...] + jnp.log(l_sc[...])


def _sub_lse_kernel(x_ref, lse_ref, o_ref, *, large):
    x = jnp.clip(x_ref[...].astype(jnp.float32), -large, large)
    o_ref[...] = (x - lse_ref[...]).astype(o_ref.dtype)


# --------------------------------------------------------------------------
# Dispatchers
# --------------------------------------------------------------------------

def _log_softmax_last(x2, *, large, vmem_limit, block_budget):
    """log_softmax along the last axis of a 2-D array."""
    rows, cols = x2.shape
    elem_bytes = jnp.dtype(x2.dtype).itemsize
    sub = _sublane(elem_bytes)
    cols_pad = _round_up(cols, 128)

    # f32-equivalent bytes of a minimal (sub, cols_pad) block.
    min_block_f32 = sub * cols_pad * 4

    if min_block_f32 <= block_budget:
        # ---- single-pass path: whole reduction axis inside one block ----
        rb = max(sub, (block_budget // (cols_pad * 4)) // sub * sub)
        # Keep >= ~4 grid steps so pipelining / megacore sharding have work.
        rb = min(rb, max(sub, _round_up(_cdiv(rows, 4), sub)))
        if rb >= rows:
            rb = rows
        else:
            rb = _even_steps(rows, rb, sub)

        return pl.pallas_call(
            functools.partial(_log_softmax_last_kernel, large=large),
            out_shape=jax.ShapeDtypeStruct((rows, cols), x2.dtype),
            grid_spec=pltpu.PrefetchScalarGridSpec(
                num_scalar_prefetch=0,
                grid=(_cdiv(rows, rb),),
                in_specs=[pl.BlockSpec((rb, cols), lambda i: (i, 0))],
                out_specs=pl.BlockSpec((rb, cols), lambda i: (i, 0)),
            ),
            compiler_params=pltpu.CompilerParams(
                dimension_semantics=("parallel",),
                vmem_limit_bytes=vmem_limit,
            ),
        )(x2)

    # ---- online-LSE fallback: reduction axis split across an "arbitrary"
    # grid axis, running max / sum-exp kept in VMEM scratch ----
    cb = max(128, (block_budget // (sub * 4)) // 128 * 128)
    cb = min(cb, cols_pad)
    rb = max(sub, (block_budget // (cb * 4)) // sub * sub)
    if rb >= rows:
        rb = rows
    else:
        rb = _even_steps(rows, rb, sub)
    grid = (_cdiv(rows, rb), _cdiv(cols, cb))

    lse = pl.pallas_call(
        functools.partial(_lse_last_kernel, large=large, cols=cols),
        out_shape=jax.ShapeDtypeStruct((rows, 1), jnp.float32),
        grid_spec=pltpu.PrefetchScalarGridSpec(
            num_scalar_prefetch=0,
            grid=grid,
            in_specs=[pl.BlockSpec((rb, cb), lambda i, j: (i, j))],
            out_specs=pl.BlockSpec((rb, 1), lambda i, j: (i, 0)),
            scratch_shapes=[pltpu.VMEM((rb, 1), jnp.float32),
                            pltpu.VMEM((rb, 1), jnp.float32)],
        ),
        compiler_params=pltpu.CompilerParams(
            dimension_semantics=("parallel", "arbitrary"),
            vmem_limit_bytes=vmem_limit,
        ),
    )(x2)

    return pl.pallas_call(
        functools.partial(_sub_lse_kernel, large=large),
        out_shape=jax.ShapeDtypeStruct((rows, cols), x2.dtype),
        grid_spec=pltpu.PrefetchScalarGridSpec(
            num_scalar_prefetch=0,
            grid=grid,
            in_specs=[pl.BlockSpec((rb, cb), lambda i, j: (i, j)),
                      pl.BlockSpec((rb, 1), lambda i, j: (i, 0))],
            out_specs=pl.BlockSpec((rb, cb), lambda i, j: (i, j)),
        ),
        compiler_params=pltpu.CompilerParams(
            dimension_semantics=("parallel", "parallel"),
            vmem_limit_bytes=vmem_limit,
        ),
    )(x2, lse)


def _log_softmax_mid(x3, *, large, vmem_limit, block_budget):
    """log_softmax along the middle axis of a [pre, red, post] array."""
    pre, red, post = x3.shape
    elem_bytes = jnp.dtype(x3.dtype).itemsize
    sub = _sublane(elem_bytes)
    red_pad = _round_up(red, sub)   # sublane padding counts against VMEM

    # Lane tile over `post`: lane-dense multiple of 128, or the full axis.
    pt = max(128, (block_budget // (red_pad * 4)) // 128 * 128)
    if pt >= post:
        pt = post
    n_pt = _cdiv(post, pt)

    # Batch `pre` slices per block where there is headroom, but keep enough
    # grid steps for pipelining / megacore sharding.
    pb = max(1, block_budget // (red_pad * pt * 4))
    if n_pt == 1:
        pb = min(pb, max(1, _cdiv(pre, 4)))
    pb = min(pb, pre)
    if pb < pre and n_pt % 2 == 1:
        pb = _even_steps(pre, pb, 1)

    return pl.pallas_call(
        functools.partial(_log_softmax_mid_kernel, large=large),
        out_shape=jax.ShapeDtypeStruct((pre, red, post), x3.dtype),
        grid_spec=pltpu.PrefetchScalarGridSpec(
            num_scalar_prefetch=0,
            grid=(_cdiv(pre, pb), n_pt),
            in_specs=[pl.BlockSpec((pb, red, pt), lambda i, j: (i, 0, j))],
            out_specs=pl.BlockSpec((pb, red, pt), lambda i, j: (i, 0, j)),
        ),
        compiler_params=pltpu.CompilerParams(
            dimension_semantics=("parallel", "parallel"),
            vmem_limit_bytes=vmem_limit,
        ),
    )(x3)


def safe_log_softmax(x, dim=-1, *, _block_budget_bytes=None,
                     _vmem_limit_bytes=None):
    """Pallas implementation of SafeLogSoftmax.forward."""
    ndim = x.ndim
    dim = dim % ndim
    large = float(jnp.finfo(x.dtype).max)
    vmem_limit, block_budget = _vmem_budgets()
    if _vmem_limit_bytes is not None:
        vmem_limit = _vmem_limit_bytes
    if _block_budget_bytes is not None:
        block_budget = _block_budget_bytes

    if dim == ndim - 1:
        cols = x.shape[-1]
        rows = math.prod(x.shape[:-1])
        out2 = _log_softmax_last(x.reshape(rows, cols), large=large,
                                 vmem_limit=vmem_limit,
                                 block_budget=block_budget)
        return out2.reshape(x.shape)

    red = x.shape[dim]
    pre = math.prod(x.shape[:dim]) if dim > 0 else 1
    post = math.prod(x.shape[dim + 1:])
    elem_bytes = jnp.dtype(x.dtype).itemsize
    red_pad = _round_up(red, _sublane(elem_bytes))
    mid_min_block_f32 = red_pad * 128 * 4

    if post >= 128 and mid_min_block_f32 <= block_budget:
        out3 = _log_softmax_mid(x.reshape(pre, red, post), large=large,
                                vmem_limit=vmem_limit,
                                block_budget=block_budget)
        return out3.reshape(x.shape)

    # post < 128 (masked stores would dominate) or `red` too long for one
    # block: move the reduction axis last and reuse the last-axis path (which
    # includes the online-LSE chunked fallback for very long axes).
    xt = jnp.moveaxis(x, dim, -1)
    rows_t = math.prod(xt.shape[:-1])
    out_t = _log_softmax_last(xt.reshape(rows_t, red), large=large,
                              vmem_limit=vmem_limit,
                              block_budget=block_budget)
    return jnp.moveaxis(out_t.reshape(xt.shape), -1, dim)


# --------------------------------------------------------------------------
# Reference + demo
# --------------------------------------------------------------------------

def _reference(x, dim=-1):
    # Exact JAX transcription of the torch module.
    large = jnp.finfo(x.dtype).max
    x_rep = jnp.where(x == jnp.inf, jnp.asarray(large, x.dtype), x)
    x_rep = jnp.where(x == -jnp.inf, jnp.asarray(-large, x.dtype), x_rep)
    x_stable = x_rep - jnp.max(x_rep, axis=dim, keepdims=True)
    return jax.nn.log_softmax(x_stable, axis=dim)


if __name__ == "__main__":
    key = jax.random.PRNGKey(0)
    B, C, H, W = 2, 4, 16, 16
    x = jax.random.normal(key, (B, C, H, W), dtype=jnp.float32) * 5.0
    # Inject some inf / -inf values to exercise the "safe" path.
    x = x.at[0, 0, 0, 3].set(jnp.inf)
    x = x.at[1, 2, 5, 7].set(-jnp.inf)
    x = x.at[0, 3, 1, 0].set(jnp.inf)

    # Case A: softmax along the last axis (lane reduction).
    out_last = jax.block_until_ready(safe_log_softmax(x, dim=-1))
    ref_last = _reference(x, dim=-1)
    assert out_last.shape == x.shape and out_last.dtype == x.dtype
    assert jnp.allclose(out_last, ref_last, atol=1e-5, rtol=1e-5), "dim=-1 mismatch"

    # Case B: softmax along the channel axis (sublane reduction, no transpose).
    out_ch = jax.block_until_ready(safe_log_softmax(x, dim=1))
    ref_ch = _reference(x, dim=1)
    assert out_ch.shape == x.shape and out_ch.dtype == x.dtype
    assert jnp.allclose(out_ch, ref_ch, atol=1e-5, rtol=1e-5), "dim=1 mismatch"

    # Case C: post < 128 -> moveaxis fallback through the last-axis path.
    key, k2 = jax.random.split(key)
    x3 = jax.random.normal(k2, (8, 16, 32), dtype=jnp.float32) * 3.0
    x3 = x3.at[2, 5, 7].set(jnp.inf)
    out_c = jax.block_until_ready(safe_log_softmax(x3, dim=1))
    assert jnp.allclose(out_c, _reference(x3, dim=1), atol=1e-5, rtol=1e-5), \
        "post<128 fallback mismatch"

    # Case D: online-LSE chunked path (forced via a tiny block budget).
    key, k3 = jax.random.split(key)
    xd = jax.random.normal(k3, (16, 512), dtype=jnp.float32) * 4.0
    xd = xd.at[0, 300].set(jnp.inf)
    xd = xd.at[3, 17].set(-jnp.inf)
    out_d = jax.block_until_ready(
        safe_log_softmax(xd, dim=-1, _block_budget_bytes=4096))
    assert jnp.allclose(out_d, _reference(xd, dim=-1), atol=1e-5, rtol=1e-5), \
        "online-LSE path mismatch"

    print("KERNEL_OK")
</pallas_src>

<mosaic_0001>
module attributes {stable_mosaic.version = 11 : i64} {
  func.func @_log_softmax_last_kernel(%arg0: i32, %arg1: memref<32x16xf32, #tpu.memory_space<vmem>>, %arg2: memref<32x16xf32, #tpu.memory_space<vmem>>) attributes {dimension_semantics = [#tpu.dimension_semantics<parallel>], iteration_bounds = array<i64: 4>, scalar_prefetch = 0 : i64, scratch_operands = 0 : i64, tpu.core_type = #tpu.core_type<tc>, window_params = [{transform_indices = @transform_0, window_bounds = array<i64: 32, 16>}, {transform_indices = @transform_1, window_bounds = array<i64: 32, 16>}]} {
    %c0 = arith.constant 0 : index
    %c0_0 = arith.constant 0 : index
    %0 = vector.load %arg1[%c0, %c0_0] : memref<32x16xf32, #tpu.memory_space<vmem>>, vector<32x16xf32>
    %cst = arith.constant -3.40282347E+38 : f32
    %cst_1 = arith.constant 3.40282347E+38 : f32
    %1 = vector.broadcast %cst : f32 to vector<32x16xf32>
    %2 = arith.maximumf %1, %0 : vector<32x16xf32>
    %3 = vector.broadcast %cst_1 : f32 to vector<32x16xf32>
    %4 = arith.minimumf %3, %2 : vector<32x16xf32>
    %cst_2 = arith.constant dense<0xFF800000> : vector<32xf32>
    %5 = vector.multi_reduction <maximumf>, %4, %cst_2 [1] : vector<32x16xf32> to vector<32xf32>
    %6 = vector.shape_cast %5 : vector<32xf32> to vector<32x1xf32>
    %7 = vector.broadcast %6 : vector<32x1xf32> to vector<32x16xf32>
    %8 = arith.subf %4, %7 : vector<32x16xf32>
    %9 = math.exp %8 : vector<32x16xf32>
    %cst_3 = arith.constant dense<0.000000e+00> : vector<32xf32>
    %10 = vector.multi_reduction <add>, %9, %cst_3 [1] : vector<32x16xf32> to vector<32xf32>
    %11 = vector.shape_cast %10 : vector<32xf32> to vector<32x1xf32>
    %12 = math.log %11 : vector<32x1xf32>
    %13 = arith.addf %6, %12 : vector<32x1xf32>
    %c0_4 = arith.constant 0 : index
    %c0_5 = arith.constant 0 : index
    %14 = vector.load %arg1[%c0_4, %c0_5] : memref<32x16xf32, #tpu.memory_space<vmem>>, vector<32x16xf32>
    %cst_6 = arith.constant -3.40282347E+38 : f32
    %cst_7 = arith.constant 3.40282347E+38 : f32
    %15 = vector.broadcast %cst_6 : f32 to vector<32x16xf32>
    %16 = arith.maximumf %15, %14 : vector<32x16xf32>
    %17 = vector.broadcast %cst_7 : f32 to vector<32x16xf32>
    %18 = arith.minimumf %17, %16 : vector<32x16xf32>
    %19 = vector.broadcast %13 : vector<32x1xf32> to vector<32x16xf32>
    %20 = arith.subf %18, %19 : vector<32x16xf32>
    %c0_8 = arith.constant 0 : index
    %c0_9 = arith.constant 0 : index
    %21 = vector.load %arg2[%c0_8, %c0_9] : memref<32x16xf32, #tpu.memory_space<vmem>>, vector<32x16xf32>
    tpu.vector_store %arg2[%c0_8, %c0_9], %20 {strides = array<i32>} : memref<32x16xf32, #tpu.memory_space<vmem>>, vector<32x16xf32>,
    return
  }
  func.func @transform_0(%arg0: i32) -> (i32, i32) {
    %c0_i32 = arith.constant 0 : i32
    %c0_i32_0 = arith.constant 0 : i32
    return %arg0, %c0_i32 : i32, i32
  }
  func.func @transform_1(%arg0: i32) -> (i32, i32) {
    %c0_i32 = arith.constant 0 : i32
    %c0_i32_0 = arith.constant 0 : i32
    return %arg0, %c0_i32 : i32, i32
  }
}

</mosaic_0001>

<bundles_post_ra>
// kernel: tpu_custom_call.1
= control target key start
LH: loop header
LB: loop body
LE: loop exit
PB: predicated region body
PF: predicated region fallthrough
CT: control target
= control target key end

     0   :  { %s302_s6 = smov 0   ;;  %s353_s0 = inlined_call_operand.vmem [shape: f32[128,16], index: 0, kind: input, shape index: {}]   ;;  %s354_s1 = inlined_call_operand.vmem [shape: f32[128,16], index: 1, kind: output, shape index: {}]  }
   0x1 LB: > { %s245_s7 = sadd.s32 4294967295, %s290_s6   ;;  %p249_p0 = scmp.ge.s32.totalorder %s290_s6, 1  ;;  %s290_s6 = sphi %s302_s6, %s11_s6  }
   0x2   : > { %p88_p1 = scmp.lt.s32.totalorder %s290_s6, 5 }
   0x4   : > { %p89_p2 = pnand %p249_p0, %p88_p1 }
   0x5   : > { %s250_s8 = sshll.u32 (!%p89_p2), %s245_s7, 2 }
   0x6   : > { %92 = sbr.rel (%p89_p2) target bundleno = 342 (0x156), region = 24  ;;  %p109_p3 = scmp.lt.s32.totalorder (!%p89_p2), %s250_s8, 15 }
   0xb   : > { %s356_s8 = smov (!%p109_p3, %s250_s8), 15  ;;  %vm132_vm0 = vcmask 130048  }
   0xc   : > { %s251_s9 = sshll.u32 %s356_s8, 3 }
   0xd   : > { %s112_s12 = scalar_lea.vmem %s353_s0, %s251_s9  ;;  %s118_s15 = scalar_lea.vmem %s354_s1, %s251_s9 }
   0xe   : > { %v120_v0 = vld [vmem:[%s112_s12] sm:$0xff]  ;;  %v122_v1 = vld [vmem:[%s112_s12 + $0x10] sm:$0xff]  ;;  %v121_v2 = vld [vmem:[%s112_s12 + $0x8] sm:$0xff] }
   0xf   : > { %v254_v3 = vclamps-f32 %v120_v0, 3.4028235e+38  ;;  %v318_v4 = vclamps-f32 %v122_v1, 3.4028235e+38  ;;  %v320_v5 = vclamps-f32 %v121_v2, 3.4028235e+38 }
  0x10   : > { %v123_v6 = vld [vmem:[%s112_s12 + $0x18] sm:$0xff] }
  0x11   : > { %v133_v7 = vsel %vm132_vm0, %v254_v3, -inf  ;;  %v139_v8 = vsel %vm132_vm0, %v318_v4, -inf  ;;  %v325_v9 = vclamps-f32 %v123_v6, 3.4028235e+38  ;;  %v136_v10 = vsel %vm132_vm0, %v320_v5, -inf }
  0x12   : > { %134 = vmax.xlane.f32.xlu0 %v133_v7  ;;  %140 = vmax.xlane.f32.xlu1 %v139_v8 }
  0x13   : > { %v142_v11 = vsel %vm132_vm0, %v325_v9, -inf }
  0x16   : > { %137 = vmax.xlane.f32.xlu0 %v136_v10  ;;  %143 = vmax.xlane.f32.xlu1 %v142_v11 }
  0x9b   : > { %v135_v12 = vpop.xlane.xlu0 %134  ;;  %v141_v13 = vpop.xlane.xlu1 %140 }
  0x9c   : > { %v145_v14 = vsub.f32 %v254_v3, %v135_v12  ;;  %v147_v15 = vsub.f32 %v318_v4, %v141_v13 }
  0x9e   : > { %v149_v16 = vmul.f32 1.442695, %v145_v14  ;;  %v153_v17 = vmul.f32 1.442695, %v147_v15 }
  0x9f   : > { %v138_v18 = vpop.xlane.xlu0 %137  ;;  %v144_v19 = vpop.xlane.xlu1 %143 }
  0xa0   : > { %268 = vpow2.f32 %v149_v16  ;;  %v146_v20 = vsub.f32 %v320_v5, %v138_v18  ;;  %v148_v21 = vsub.f32 %v325_v9, %v144_v19 }
  0xa1   : > { %270 = vpow2.f32 %v153_v17 }
  0xa2   : > { %v151_v22 = vmul.f32 1.442695, %v146_v20  ;;  %v155_v23 = vmul.f32 1.442695, %v148_v21 }
  0xa4   : > { %272 = vpow2.f32 %v151_v22 }
  0xa5   : > { %274 = vpow2.f32 %v155_v23 }
  0xad   : > { %v269_v24 = vpop.eup %268 }
  0xae   : > { %v271_v25 = vpop.eup %270  ;;  %v157_v26 = vsel %vm132_vm0, %v269_v24, 0.0 }
  0xaf   : > { %158 = vadd.xlane.f32.xlu0 %v157_v26  ;;  %v163_v27 = vsel %vm132_vm0, %v271_v25, 0.0 }
  0xb1   : > { %v273_v28 = vpop.eup %272 }
  0xb2   : > { %v275_v29 = vpop.eup %274  ;;  %v160_v30 = vsel %vm132_vm0, %v273_v28, 0.0 }
  0xb3   : > { %164 = vadd.xlane.f32.xlu0 %v163_v27  ;;  %161 = vadd.xlane.f32.xlu1 %v160_v30  ;;  %v166_v31 = vsel %vm132_vm0, %v275_v29, 0.0 }
  0xb7   : > { %167 = vadd.xlane.f32.xlu1 %v166_v31 }
 0x138   : > { %v159_v32 = vpop.xlane.xlu0 %158 }
 0x139   : > { %276 = vlog2.f32 %v159_v32 }
 0x13c   : > { %v162_v33 = vpop.xlane.xlu1 %161  ;;  %v165_v34 = vpop.xlane.xlu0 %164 }
 0x13d   : > { %278 = vlog2.f32 %v162_v33 }
 0x13e   : > { %280 = vlog2.f32 %v165_v34 }
 0x140   : > { %v168_v35 = vpop.xlane.xlu1 %167 }
 0x141   : > { %282 = vlog2.f32 %v168_v35 }
 0x146   : > { %v277_v36 = vpop.eup %276 }
 0x147   : > { %v170_v37 = vmul.f32 0.6931472, %v277_v36 }
 0x149   : > { %v177_v38 = vadd.f32 %v170_v37, %v135_v12 }
 0x14a   : > { %v279_v39 = vpop.eup %278 }
 0x14b   : > { %v281_v40 = vpop.eup %280  ;;  %v181_v41 = vsub.f32 %v254_v3, %v177_v38  ;;  %v172_v42 = vmul.f32 0.6931472, %v279_v39 }
 0x14c   : > { %v174_v43 = vmul.f32 0.6931472, %v281_v40 }
 0x14d   : > { %185 = vst.msk [vmem:[%s118_s15] sm:$0xff] %vm132_vm0, %v181_v41  ;;  %v178_v44 = vadd.f32 %v172_v42, %v138_v18 }
 0x14e   : > { %v283_v45 = vpop.eup %282  ;;  %v179_v46 = vadd.f32 %v174_v43, %v141_v13 }
 0x14f   : > { %v182_v47 = vsub.f32 %v320_v5, %v178_v44  ;;  %v176_v48 = vmul.f32 0.6931472, %v283_v45 }
 0x150   : > { %v183_v49 = vsub.f32 %v318_v4, %v179_v46 }
 0x151   : > { %186 = vst.msk [vmem:[%s118_s15 + $0x8] sm:$0xff] %vm132_vm0, %v182_v47  ;;  %v180_v50 = vadd.f32 %v176_v48, %v144_v19 }
 0x152   : > { %187 = vst.msk [vmem:[%s118_s15 + $0x10] sm:$0xff] %vm132_vm0, %v183_v49 }
 0x153   : > { %v184_v51 = vsub.f32 %v325_v9, %v180_v50 }
 0x155   : > { %188 = vst.msk [vmem:[%s118_s15 + $0x18] sm:$0xff] %vm132_vm0, %v184_v51 }
 0x156 PF: > { %s11_s6 = sadd.s32 1, %s290_s6  }
 0x157   : > { %p8_p4 = scmp.ge.s32.totalorder %s11_s6, 6  }
 0x159   :  { %10 = sbr.rel (!%p8_p4) target bundleno = 1 (0x1), region = 54 }

</bundles_post_ra>
